<compile_context>
chip_gen: v7x
topology: tpu7x:2x2x1
jax: 0.10.0
libtpu: 0.0.40
codegen_flags: <defaults>
</compile_context>

<pallas_src>
import jax
import jax.numpy as jnp
from jax.experimental import pallas as pl
from jax.experimental.pallas import tpu as pltpu

PAD = 3  # max per-conv half receptive field (k=7 depthwise / k=3 dilation=3)


def _gelu(x):
    # tanh-approx GELU: tanh lowers to the EUP slot instead of ~15 VALU ops.
    # TODO(synk): nn.GELU() default is exact erf; tanh approx differs slightly.
    c = 0.7978845608028654  # sqrt(2/pi)
    return 0.5 * x * (1.0 + jnp.tanh(c * (x + 0.044715 * x * x * x)))


# --------------------------------- kernel ---------------------------------

def dcb_kernel(x_ref,
               w_dw1_ref, s1_ref, t1_ref,
               w_d1_ref, s2_ref, t2_ref,
               w_d2_ref, s3_ref, t3_ref,
               w_pw_ref, s4_ref, t4_ref,
               w_dw2_ref, s5_ref, t5_ref,
               w_fc1_ref, b_fc1_ref,
               w_fc2_ref, s6_ref, t6_ref,
               o_ref, pad_ref):
    C = x_ref.shape[1]
    L = x_ref.shape[2]
    x = x_ref[0]  # (C, L) f32; channels -> sublanes, length -> lanes

    # One persistent padded buffer (C, L+2*PAD) reused by every conv in the
    # block.  Halo lanes are zeroed once per grid step; only the interior is
    # rewritten before each conv (no per-call jnp.zeros + concatenate copies).
    pad_ref[:, :PAD] = jnp.zeros((C, PAD), jnp.float32)
    pad_ref[:, PAD + L:] = jnp.zeros((C, PAD), jnp.float32)

    def set_padded(v):
        pad_ref[:, PAD:PAD + L] = v

    def dw7(w_ref):
        # depthwise conv1d, kernel=7, padding=3, groups=C  (VPU, f32).
        w = w_ref[...]  # (C, 7)
        acc = jnp.zeros((C, L), jnp.float32)
        for t in range(7):
            acc = acc + pad_ref[:, t:t + L] * w[:, t:t + 1]
        return acc

    def dil3(w_ref, d):
        # conv1d kernel=3, dilation=d, padding=d; the 3 taps are fused into a
        # single MXU matmul: (C, 3C) x (3C, L), bf16 in, f32 accumulate.
        taps = jnp.concatenate(
            [pad_ref[:, PAD - d:PAD - d + L],
             pad_ref[:, PAD:PAD + L],
             pad_ref[:, PAD + d:PAD + d + L]], axis=0)           # (3C, L)
        return jnp.dot(w_ref[...], taps.astype(jnp.bfloat16),
                       preferred_element_type=jnp.float32)       # (C, L) f32

    def pw(w_ref, v):
        # 1x1 conv as a matmul, bf16 operands, f32 accumulation.
        return jnp.dot(w_ref[...], v.astype(jnp.bfloat16),
                       preferred_element_type=jnp.float32)

    # ---------------- MSDPM branch:  x + msdpm(x) ----------------
    set_padded(x)
    y = _gelu(dw7(w_dw1_ref) * s1_ref[...] + t1_ref[...])        # initial_dw + BN + GELU
    set_padded(y)                                                # one fill for BOTH dilated convs
    z2 = _gelu(dil3(w_d1_ref, 2) * s2_ref[...] + t2_ref[...])    # dilated_conv1 + BN + GELU
    z3 = _gelu(dil3(w_d2_ref, 3) * s3_ref[...] + t3_ref[...])    # dilated_conv2 + BN + GELU
    z = _gelu(z2 + z3)
    msd = pw(w_pw_ref, z) * s4_ref[...] + t4_ref[...]            # final_conv + BN
    x1 = x + msd

    # ---------------- LK_FFN branch:  x1 + lk_ffn(x1) ----------------
    set_padded(x1)
    a = dw7(w_dw2_ref) * s5_ref[...] + t5_ref[...]               # dw_conv + BN
    h = _gelu(pw(w_fc1_ref, a) + b_fc1_ref[...])                 # fc1 + GELU
    c = pw(w_fc2_ref, h) * s6_ref[...] + t6_ref[...]             # fc2 + BN
    o_ref[0] = (x1 + c).astype(o_ref.dtype)


# -------------------------------- wrapper ----------------------------------

def dcb_forward(x_ncl, params):
    N, C, L = x_ncl.shape

    def full(a):
        nd = a.ndim
        return pl.BlockSpec(a.shape, lambda n, _nd=nd: (0,) * _nd)

    p = params
    weights = [p["w_dw1"], p["s1"], p["t1"],
               p["w_d1"], p["s2"], p["t2"],
               p["w_d2"], p["s3"], p["t3"],
               p["w_pw"], p["s4"], p["t4"],
               p["w_dw2"], p["s5"], p["t5"],
               p["w_fc1"], p["b_fc1"],
               p["w_fc2"], p["s6"], p["t6"]]

    in_specs = ([pl.BlockSpec((1, C, L), lambda n: (n, 0, 0))]
                + [full(w) for w in weights])

    return pl.pallas_call(
        dcb_kernel,
        out_shape=jax.ShapeDtypeStruct((N, C, L), jnp.float32),
        grid=(N,),
        in_specs=in_specs,
        out_specs=pl.BlockSpec((1, C, L), lambda n: (n, 0, 0)),
        scratch_shapes=[pltpu.VMEM((C, L + 2 * PAD), jnp.float32)],
        compiler_params=pltpu.CompilerParams(
            dimension_semantics=("parallel",)),
    )(x_ncl, *weights)


# -------------------- deterministic parameter construction --------------------

def init_params(key, C, expansion_factor=4):
    H = C * expansion_factor
    eps = 1e-5
    keys = iter(jax.random.split(key, 64))

    def rnd(shape, scale=0.4):
        return scale * jax.random.normal(next(keys), shape, jnp.float32)

    def bn_params(c):
        gamma = 1.0 + 0.1 * jax.random.normal(next(keys), (c,), jnp.float32)
        beta = 0.05 * jax.random.normal(next(keys), (c,), jnp.float32)
        mean = 0.01 * jax.random.normal(next(keys), (c,), jnp.float32)
        var = 1.0 + 0.1 * jax.random.uniform(next(keys), (c,), jnp.float32)
        return gamma, beta, mean, var

    # --- PyTorch-shaped weights (deterministic synthetic init) ---
    raw = {}
    raw["w_dw1"], raw["b_dw1"] = rnd((C, 1, 7)), rnd((C,), 0.05)
    raw["bn1"] = bn_params(C)
    raw["w_d1"], raw["b_d1"] = rnd((C, C, 3)), rnd((C,), 0.05)
    raw["bn2"] = bn_params(C)
    raw["w_d2"], raw["b_d2"] = rnd((C, C, 3)), rnd((C,), 0.05)
    raw["bn3"] = bn_params(C)
    raw["w_pw"], raw["b_pw"] = rnd((C, C, 1)), rnd((C,), 0.05)
    raw["bn4"] = bn_params(C)
    raw["w_dw2"], raw["b_dw2"] = rnd((C, 1, 7)), rnd((C,), 0.05)
    raw["bn5"] = bn_params(C)
    raw["w_fc1"], raw["b_fc1"] = rnd((H, C, 1)), rnd((H,), 0.05)
    raw["w_fc2"], raw["b_fc2"] = rnd((C, H, 1)), rnd((C,), 0.05)
    raw["bn6"] = bn_params(C)

    def fold(bn, bias):
        gamma, beta, mean, var = bn
        scale = gamma / jnp.sqrt(var + eps)
        shift = scale * (bias - mean) + beta
        return scale.reshape(-1, 1), shift.reshape(-1, 1)

    def fuse3(w):  # (Cout, Cin, 3) -> (Cout, 3*Cin) bf16, tap-major blocks
        co, ci, k = w.shape
        return jnp.transpose(w, (0, 2, 1)).reshape(co, k * ci).astype(jnp.bfloat16)

    # --- convert to kernel layout (bf16 for MXU weights, f32 elsewhere) ---
    params = {}
    params["w_dw1"] = raw["w_dw1"][:, 0, :]                        # (C, 7)  f32
    params["s1"], params["t1"] = fold(raw["bn1"], raw["b_dw1"])    # (C, 1)
    params["w_d1"] = fuse3(raw["w_d1"])                            # (C, 3C) bf16
    params["s2"], params["t2"] = fold(raw["bn2"], raw["b_d1"])
    params["w_d2"] = fuse3(raw["w_d2"])                            # (C, 3C) bf16
    params["s3"], params["t3"] = fold(raw["bn3"], raw["b_d2"])
    params["w_pw"] = raw["w_pw"][:, :, 0].astype(jnp.bfloat16)     # (C, C)  bf16
    params["s4"], params["t4"] = fold(raw["bn4"], raw["b_pw"])
    params["w_dw2"] = raw["w_dw2"][:, 0, :]                        # (C, 7)  f32
    params["s5"], params["t5"] = fold(raw["bn5"], raw["b_dw2"])
    params["w_fc1"] = raw["w_fc1"][:, :, 0].astype(jnp.bfloat16)   # (H, C)  bf16
    params["b_fc1"] = raw["b_fc1"].reshape(-1, 1)                  # (H, 1)  f32
    params["w_fc2"] = raw["w_fc2"][:, :, 0].astype(jnp.bfloat16)   # (C, H)  bf16
    params["s6"], params["t6"] = fold(raw["bn6"], raw["b_fc2"])
    return params, raw


# ----------------------- plain-JAX reference (NCL) --------------------------

def dcb_reference(x, raw, eps=1e-5):
    N, C, L = x.shape

    def bn(v, p, bias):
        gamma, beta, mean, var = p
        g = (gamma / jnp.sqrt(var + eps)).reshape(1, -1, 1)
        return (v + bias.reshape(1, -1, 1) - mean.reshape(1, -1, 1)) * g \
            + beta.reshape(1, -1, 1)

    def dw_conv(v, w):  # w (C,1,7), padding=3, groups=C
        vp = jnp.pad(v, ((0, 0), (0, 0), (3, 3)))
        out = jnp.zeros_like(v)
        for t in range(7):
            out = out + vp[:, :, t:t + L] * w[:, 0, t].reshape(1, -1, 1)
        return out

    def conv3(v, w, d):  # w (Cout,Cin,3), dilation=d, padding=d
        vp = jnp.pad(v, ((0, 0), (0, 0), (d, d)))
        out = jnp.zeros((N, w.shape[0], L), jnp.float32)
        for t in range(3):
            out = out + jnp.einsum(
                "oc,ncl->nol", w[:, :, t].astype(jnp.bfloat16),
                vp[:, :, t * d:t * d + L].astype(jnp.bfloat16),
                preferred_element_type=jnp.float32)
        return out

    def conv1(v, w):  # w (Cout,Cin,1)
        return jnp.einsum("oc,ncl->nol", w[:, :, 0].astype(jnp.bfloat16),
                          v.astype(jnp.bfloat16),
                          preferred_element_type=jnp.float32)

    # MSDPM
    y = _gelu(bn(dw_conv(x, raw["w_dw1"]), raw["bn1"], raw["b_dw1"]))
    z2 = _gelu(bn(conv3(y, raw["w_d1"], 2), raw["bn2"], raw["b_d1"]))
    z3 = _gelu(bn(conv3(y, raw["w_d2"], 3), raw["bn3"], raw["b_d2"]))
    z = _gelu(z2 + z3)
    x1 = x + bn(conv1(z, raw["w_pw"]), raw["bn4"], raw["b_pw"])
    # LK_FFN
    a = bn(dw_conv(x1, raw["w_dw2"]), raw["bn5"], raw["b_dw2"])
    h = _gelu(conv1(a, raw["w_fc1"]) + raw["b_fc1"].reshape(1, -1, 1))
    c = bn(conv1(h, raw["w_fc2"]), raw["bn6"], raw["b_fc2"])
    return x1 + c


if __name__ == "__main__":
    key = jax.random.PRNGKey(0)
    kx, kp = jax.random.split(key)

    N, C, L = 2, 4, 16          # batch, channels, sequence length
    x = jax.random.normal(kx, (N, C, L), jnp.float32)
    params, raw = init_params(kp, C, expansion_factor=4)

    out = jax.block_until_ready(dcb_forward(x, params))
    ref = jax.block_until_ready(dcb_reference(x, raw))

    assert out.shape == (N, C, L)
    assert bool(jnp.all(jnp.isfinite(out)))
    err = float(jnp.max(jnp.abs(out - ref)))
    assert err < 2e-2, f"max abs err {err}"
    print("KERNEL_OK")
</pallas_src>

<mosaic_0001>
module attributes {stable_mosaic.version = 11 : i64} {
  func.func @dcb_kernel(%arg0: i32, %arg1: memref<1x4x16xf32, #tpu.memory_space<vmem>>, %arg2: memref<4x7xf32, #tpu.memory_space<vmem>>, %arg3: memref<4x1xf32, #tpu.memory_space<vmem>>, %arg4: memref<4x1xf32, #tpu.memory_space<vmem>>, %arg5: memref<4x12xbf16, #tpu.memory_space<vmem>>, %arg6: memref<4x1xf32, #tpu.memory_space<vmem>>, %arg7: memref<4x1xf32, #tpu.memory_space<vmem>>, %arg8: memref<4x12xbf16, #tpu.memory_space<vmem>>, %arg9: memref<4x1xf32, #tpu.memory_space<vmem>>, %arg10: memref<4x1xf32, #tpu.memory_space<vmem>>, %arg11: memref<4x4xbf16, #tpu.memory_space<vmem>>, %arg12: memref<4x1xf32, #tpu.memory_space<vmem>>, %arg13: memref<4x1xf32, #tpu.memory_space<vmem>>, %arg14: memref<4x7xf32, #tpu.memory_space<vmem>>, %arg15: memref<4x1xf32, #tpu.memory_space<vmem>>, %arg16: memref<4x1xf32, #tpu.memory_space<vmem>>, %arg17: memref<16x4xbf16, #tpu.memory_space<vmem>>, %arg18: memref<16x1xf32, #tpu.memory_space<vmem>>, %arg19: memref<4x16xbf16, #tpu.memory_space<vmem>>, %arg20: memref<4x1xf32, #tpu.memory_space<vmem>>, %arg21: memref<4x1xf32, #tpu.memory_space<vmem>>, %arg22: memref<1x4x16xf32, #tpu.memory_space<vmem>>, %arg23: memref<4x22xf32, #tpu.memory_space<vmem>>) attributes {dimension_semantics = [#tpu.dimension_semantics<parallel>], iteration_bounds = array<i64: 2>, scalar_prefetch = 0 : i64, scratch_operands = 1 : i64, tpu.core_type = #tpu.core_type<tc>, window_params = [{transform_indices = @transform_0, window_bounds = array<i64: 1, 4, 16>}, {pipeline_mode = #tpu.pipeline_mode<synchronous>, transform_indices = @transform_1, window_bounds = array<i64: 4, 7>}, {pipeline_mode = #tpu.pipeline_mode<synchronous>, transform_indices = @transform_2, window_bounds = array<i64: 4, 1>}, {pipeline_mode = #tpu.pipeline_mode<synchronous>, transform_indices = @transform_3, window_bounds = array<i64: 4, 1>}, {pipeline_mode = #tpu.pipeline_mode<synchronous>, transform_indices = @transform_4, window_bounds = array<i64: 4, 12>}, {pipeline_mode = #tpu.pipeline_mode<synchronous>, transform_indices = @transform_5, window_bounds = array<i64: 4, 1>}, {pipeline_mode = #tpu.pipeline_mode<synchronous>, transform_indices = @transform_6, window_bounds = array<i64: 4, 1>}, {pipeline_mode = #tpu.pipeline_mode<synchronous>, transform_indices = @transform_7, window_bounds = array<i64: 4, 12>}, {pipeline_mode = #tpu.pipeline_mode<synchronous>, transform_indices = @transform_8, window_bounds = array<i64: 4, 1>}, {pipeline_mode = #tpu.pipeline_mode<synchronous>, transform_indices = @transform_9, window_bounds = array<i64: 4, 1>}, {pipeline_mode = #tpu.pipeline_mode<synchronous>, transform_indices = @transform_10, window_bounds = array<i64: 4, 4>}, {pipeline_mode = #tpu.pipeline_mode<synchronous>, transform_indices = @transform_11, window_bounds = array<i64: 4, 1>}, {pipeline_mode = #tpu.pipeline_mode<synchronous>, transform_indices = @transform_12, window_bounds = array<i64: 4, 1>}, {pipeline_mode = #tpu.pipeline_mode<synchronous>, transform_indices = @transform_13, window_bounds = array<i64: 4, 7>}, {pipeline_mode = #tpu.pipeline_mode<synchronous>, transform_indices = @transform_14, window_bounds = array<i64: 4, 1>}, {pipeline_mode = #tpu.pipeline_mode<synchronous>, transform_indices = @transform_15, window_bounds = array<i64: 4, 1>}, {pipeline_mode = #tpu.pipeline_mode<synchronous>, transform_indices = @transform_16, window_bounds = array<i64: 16, 4>}, {pipeline_mode = #tpu.pipeline_mode<synchronous>, transform_indices = @transform_17, window_bounds = array<i64: 16, 1>}, {pipeline_mode = #tpu.pipeline_mode<synchronous>, transform_indices = @transform_18, window_bounds = array<i64: 4, 16>}, {pipeline_mode = #tpu.pipeline_mode<synchronous>, transform_indices = @transform_19, window_bounds = array<i64: 4, 1>}, {pipeline_mode = #tpu.pipeline_mode<synchronous>, transform_indices = @transform_20, window_bounds = array<i64: 4, 1>}, {transform_indices = @transform_21, window_bounds = array<i64: 1, 4, 16>}]} {
    %c0 = arith.constant 0 : index
    %c0_0 = arith.constant 0 : index
    %c0_1 = arith.constant 0 : index
    %0 = vector.load %arg1[%c0, %c0_0, %c0_1] : memref<1x4x16xf32, #tpu.memory_space<vmem>>, vector<1x4x16xf32>
    %1 = vector.shape_cast %0 : vector<1x4x16xf32> to vector<4x16xf32>
    %cst = arith.constant 0.000000e+00 : f32
    %2 = vector.broadcast %cst : f32 to vector<4x3xf32>
    %c0_2 = arith.constant 0 : index
    %c0_3 = arith.constant 0 : index
    %3 = vector.load %arg23[%c0_2, %c0_3] : memref<4x22xf32, #tpu.memory_space<vmem>>, vector<4x3xf32>
    tpu.vector_store %arg23[%c0_2, %c0_3], %2 {strides = array<i32>} : memref<4x22xf32, #tpu.memory_space<vmem>>, vector<4x3xf32>,
    %cst_4 = arith.constant 0.000000e+00 : f32
    %4 = vector.broadcast %cst_4 : f32 to vector<4x3xf32>
    %c0_5 = arith.constant 0 : index
    %c19 = arith.constant 19 : index
    %5 = vector.load %arg23[%c0_5, %c19] : memref<4x22xf32, #tpu.memory_space<vmem>>, vector<4x3xf32>
    tpu.vector_store %arg23[%c0_5, %c19], %4 {strides = array<i32>} : memref<4x22xf32, #tpu.memory_space<vmem>>, vector<4x3xf32>,
    %c0_6 = arith.constant 0 : index
    %c3 = arith.constant 3 : index
    %6 = vector.load %arg23[%c0_6, %c3] : memref<4x22xf32, #tpu.memory_space<vmem>>, vector<4x16xf32>
    tpu.vector_store %arg23[%c0_6, %c3], %1 {strides = array<i32>} : memref<4x22xf32, #tpu.memory_space<vmem>>, vector<4x16xf32>,
    %c0_7 = arith.constant 0 : index
    %c0_8 = arith.constant 0 : index
    %7 = vector.load %arg2[%c0_7, %c0_8] : memref<4x7xf32, #tpu.memory_space<vmem>>, vector<4x7xf32>
    %cst_9 = arith.constant 0.000000e+00 : f32
    %8 = vector.broadcast %cst_9 : f32 to vector<4x16xf32>
    %c0_10 = arith.constant 0 : index
    %c0_11 = arith.constant 0 : index
    %9 = vector.load %arg23[%c0_10, %c0_11] : memref<4x22xf32, #tpu.memory_space<vmem>>, vector<4x16xf32>
    %10 = vector.extract_strided_slice %7 {offsets = [0, 0], sizes = [4, 1], strides = [1, 1]} : vector<4x7xf32> to vector<4x1xf32>
    %11 = vector.broadcast %10 : vector<4x1xf32> to vector<4x16xf32>
    %12 = arith.mulf %9, %11 : vector<4x16xf32>
    %13 = arith.addf %8, %12 : vector<4x16xf32>
    %c0_12 = arith.constant 0 : index
    %c1 = arith.constant 1 : index
    %14 = vector.load %arg23[%c0_12, %c1] : memref<4x22xf32, #tpu.memory_space<vmem>>, vector<4x16xf32>
    %15 = vector.extract_strided_slice %7 {offsets = [0, 1], sizes = [4, 1], strides = [1, 1]} : vector<4x7xf32> to vector<4x1xf32>
    %16 = vector.broadcast %15 : vector<4x1xf32> to vector<4x16xf32>
    %17 = arith.mulf %14, %16 : vector<4x16xf32>
    %18 = arith.addf %13, %17 : vector<4x16xf32>
    %c0_13 = arith.constant 0 : index
    %c2 = arith.constant 2 : index
    %19 = vector.load %arg23[%c0_13, %c2] : memref<4x22xf32, #tpu.memory_space<vmem>>, vector<4x16xf32>
    %20 = vector.extract_strided_slice %7 {offsets = [0, 2], sizes = [4, 1], strides = [1, 1]} : vector<4x7xf32> to vector<4x1xf32>
    %21 = vector.broadcast %20 : vector<4x1xf32> to vector<4x16xf32>
    %22 = arith.mulf %19, %21 : vector<4x16xf32>
    %23 = arith.addf %18, %22 : vector<4x16xf32>
    %c0_14 = arith.constant 0 : index
    %c3_15 = arith.constant 3 : index
    %24 = vector.load %arg23[%c0_14, %c3_15] : memref<4x22xf32, #tpu.memory_space<vmem>>, vector<4x16xf32>
    %25 = vector.extract_strided_slice %7 {offsets = [0, 3], sizes = [4, 1], strides = [1, 1]} : vector<4x7xf32> to vector<4x1xf32>
    %26 = vector.broadcast %25 : vector<4x1xf32> to vector<4x16xf32>
    %27 = arith.mulf %24, %26 : vector<4x16xf32>
    %28 = arith.addf %23, %27 : vector<4x16xf32>
    %c0_16 = arith.constant 0 : index
    %c4 = arith.constant 4 : index
    %29 = vector.load %arg23[%c0_16, %c4] : memref<4x22xf32, #tpu.memory_space<vmem>>, vector<4x16xf32>
    %30 = vector.extract_strided_slice %7 {offsets = [0, 4], sizes = [4, 1], strides = [1, 1]} : vector<4x7xf32> to vector<4x1xf32>
    %31 = vector.broadcast %30 : vector<4x1xf32> to vector<4x16xf32>
    %32 = arith.mulf %29, %31 : vector<4x16xf32>
    %33 = arith.addf %28, %32 : vector<4x16xf32>
    %c0_17 = arith.constant 0 : index
    %c5 = arith.constant 5 : index
    %34 = vector.load %arg23[%c0_17, %c5] : memref<4x22xf32, #tpu.memory_space<vmem>>, vector<4x16xf32>
    %35 = vector.extract_strided_slice %7 {offsets = [0, 5], sizes = [4, 1], strides = [1, 1]} : vector<4x7xf32> to vector<4x1xf32>
    %36 = vector.broadcast %35 : vector<4x1xf32> to vector<4x16xf32>
    %37 = arith.mulf %34, %36 : vector<4x16xf32>
    %38 = arith.addf %33, %37 : vector<4x16xf32>
    %c0_18 = arith.constant 0 : index
    %c6 = arith.constant 6 : index
    %39 = vector.load %arg23[%c0_18, %c6] : memref<4x22xf32, #tpu.memory_space<vmem>>, vector<4x16xf32>
    %40 = vector.extract_strided_slice %7 {offsets = [0, 6], sizes = [4, 1], strides = [1, 1]} : vector<4x7xf32> to vector<4x1xf32>
    %41 = vector.broadcast %40 : vector<4x1xf32> to vector<4x16xf32>
    %42 = arith.mulf %39, %41 : vector<4x16xf32>
    %43 = arith.addf %38, %42 : vector<4x16xf32>
    %c0_19 = arith.constant 0 : index
    %c0_20 = arith.constant 0 : index
    %44 = vector.load %arg3[%c0_19, %c0_20] : memref<4x1xf32, #tpu.memory_space<vmem>>, vector<4x1xf32>
    %45 = vector.broadcast %44 : vector<4x1xf32> to vector<4x16xf32>
    %46 = arith.mulf %43, %45 : vector<4x16xf32>
    %c0_21 = arith.constant 0 : index
    %c0_22 = arith.constant 0 : index
    %47 = vector.load %arg4[%c0_21, %c0_22] : memref<4x1xf32, #tpu.memory_space<vmem>>, vector<4x1xf32>
    %48 = vector.broadcast %47 : vector<4x1xf32> to vector<4x16xf32>
    %49 = arith.addf %46, %48 : vector<4x16xf32>
    %cst_23 = arith.constant 5.000000e-01 : f32
    %50 = vector.broadcast %cst_23 : f32 to vector<4x16xf32>
    %51 = arith.mulf %50, %49 : vector<4x16xf32>
    %cst_24 = arith.constant 4.471500e-02 : f32
    %52 = vector.broadcast %cst_24 : f32 to vector<4x16xf32>
    %53 = arith.mulf %52, %49 : vector<4x16xf32>
    %54 = arith.mulf %53, %49 : vector<4x16xf32>
    %55 = arith.mulf %54, %49 : vector<4x16xf32>
    %56 = arith.addf %49, %55 : vector<4x16xf32>
    %cst_25 = arith.constant 0.797884583 : f32
    %57 = vector.broadcast %cst_25 : f32 to vector<4x16xf32>
    %58 = arith.mulf %57, %56 : vector<4x16xf32>
    %59 = math.tanh %58 : vector<4x16xf32>
    %cst_26 = arith.constant 1.000000e+00 : f32
    %60 = vector.broadcast %cst_26 : f32 to vector<4x16xf32>
    %61 = arith.addf %60, %59 : vector<4x16xf32>
    %62 = arith.mulf %51, %61 : vector<4x16xf32>
    %c0_27 = arith.constant 0 : index
    %c3_28 = arith.constant 3 : index
    %63 = vector.load %arg23[%c0_27, %c3_28] : memref<4x22xf32, #tpu.memory_space<vmem>>, vector<4x16xf32>
    tpu.vector_store %arg23[%c0_27, %c3_28], %62 {strides = array<i32>} : memref<4x22xf32, #tpu.memory_space<vmem>>, vector<4x16xf32>,
    %c0_29 = arith.constant 0 : index
    %c1_30 = arith.constant 1 : index
    %64 = vector.load %arg23[%c0_29, %c1_30] : memref<4x22xf32, #tpu.memory_space<vmem>>, vector<4x16xf32>
    %c0_31 = arith.constant 0 : index
    %c3_32 = arith.constant 3 : index
    %65 = vector.load %arg23[%c0_31, %c3_32] : memref<4x22xf32, #tpu.memory_space<vmem>>, vector<4x16xf32>
    %c0_33 = arith.constant 0 : index
    %c5_34 = arith.constant 5 : index
    %66 = vector.load %arg23[%c0_33, %c5_34] : memref<4x22xf32, #tpu.memory_space<vmem>>, vector<4x16xf32>
    %67 = tpu.concatenate %64, %65, %66 in 0 : vector<4x16xf32>, vector<4x16xf32>, vector<4x16xf32> -> vector<12x16xf32>
    %c0_35 = arith.constant 0 : index
    %c0_36 = arith.constant 0 : index
    %68 = vector.load %arg5[%c0_35, %c0_36] : memref<4x12xbf16, #tpu.memory_space<vmem>>, vector<4x12xbf16>
    %69 = arith.truncf %67 : vector<12x16xf32> to vector<12x16xbf16>
    %cst_37 = arith.constant dense<0.000000e+00> : vector<4x16xf32>
    %70 = tpu.matmul %68, %69, %cst_37 {dimension_numbers = #tpu.dot_dimension_numbers<[1], [0], [0], [1], [0, 0, 1, 1], [], []>} : vector<4x12xbf16>, vector<12x16xbf16>, vector<4x16xf32> -> vector<4x16xf32>
    %c0_38 = arith.constant 0 : index
    %c0_39 = arith.constant 0 : index
    %71 = vector.load %arg6[%c0_38, %c0_39] : memref<4x1xf32, #tpu.memory_space<vmem>>, vector<4x1xf32>
    %72 = vector.broadcast %71 : vector<4x1xf32> to vector<4x16xf32>
    %73 = arith.mulf %70, %72 : vector<4x16xf32>
    %c0_40 = arith.constant 0 : index
    %c0_41 = arith.constant 0 : index
    %74 = vector.load %arg7[%c0_40, %c0_41] : memref<4x1xf32, #tpu.memory_space<vmem>>, vector<4x1xf32>
    %75 = vector.broadcast %74 : vector<4x1xf32> to vector<4x16xf32>
    %76 = arith.addf %73, %75 : vector<4x16xf32>
    %cst_42 = arith.constant 5.000000e-01 : f32
    %77 = vector.broadcast %cst_42 : f32 to vector<4x16xf32>
    %78 = arith.mulf %77, %76 : vector<4x16xf32>
    %cst_43 = arith.constant 4.471500e-02 : f32
    %79 = vector.broadcast %cst_43 : f32 to vector<4x16xf32>
    %80 = arith.mulf %79, %76 : vector<4x16xf32>
    %81 = arith.mulf %80, %76 : vector<4x16xf32>
    %82 = arith.mulf %81, %76 : vector<4x16xf32>
    %83 = arith.addf %76, %82 : vector<4x16xf32>
    %cst_44 = arith.constant 0.797884583 : f32
    %84 = vector.broadcast %cst_44 : f32 to vector<4x16xf32>
    %85 = arith.mulf %84, %83 : vector<4x16xf32>
    %86 = math.tanh %85 : vector<4x16xf32>
    %cst_45 = arith.constant 1.000000e+00 : f32
    %87 = vector.broadcast %cst_45 : f32 to vector<4x16xf32>
    %88 = arith.addf %87, %86 : vector<4x16xf32>
    %89 = arith.mulf %78, %88 : vector<4x16xf32>
    %c0_46 = arith.constant 0 : index
    %c0_47 = arith.constant 0 : index
    %90 = vector.load %arg23[%c0_46, %c0_47] : memref<4x22xf32, #tpu.memory_space<vmem>>, vector<4x16xf32>
    %c0_48 = arith.constant 0 : index
    %c3_49 = arith.constant 3 : index
    %91 = vector.load %arg23[%c0_48, %c3_49] : memref<4x22xf32, #tpu.memory_space<vmem>>, vector<4x16xf32>
    %c0_50 = arith.constant 0 : index
    %c6_51 = arith.constant 6 : index
    %92 = vector.load %arg23[%c0_50, %c6_51] : memref<4x22xf32, #tpu.memory_space<vmem>>, vector<4x16xf32>
    %93 = tpu.concatenate %90, %91, %92 in 0 : vector<4x16xf32>, vector<4x16xf32>, vector<4x16xf32> -> vector<12x16xf32>
    %c0_52 = arith.constant 0 : index
    %c0_53 = arith.constant 0 : index
    %94 = vector.load %arg8[%c0_52, %c0_53] : memref<4x12xbf16, #tpu.memory_space<vmem>>, vector<4x12xbf16>
    %95 = arith.truncf %93 : vector<12x16xf32> to vector<12x16xbf16>
    %cst_54 = arith.constant dense<0.000000e+00> : vector<4x16xf32>
    %96 = tpu.matmul %94, %95, %cst_54 {dimension_numbers = #tpu.dot_dimension_numbers<[1], [0], [0], [1], [0, 0, 1, 1], [], []>} : vector<4x12xbf16>, vector<12x16xbf16>, vector<4x16xf32> -> vector<4x16xf32>
    %c0_55 = arith.constant 0 : index
    %c0_56 = arith.constant 0 : index
    %97 = vector.load %arg9[%c0_55, %c0_56] : memref<4x1xf32, #tpu.memory_space<vmem>>, vector<4x1xf32>
    %98 = vector.broadcast %97 : vector<4x1xf32> to vector<4x16xf32>
    %99 = arith.mulf %96, %98 : vector<4x16xf32>
    %c0_57 = arith.constant 0 : index
    %c0_58 = arith.constant 0 : index
    %100 = vector.load %arg10[%c0_57, %c0_58] : memref<4x1xf32, #tpu.memory_space<vmem>>, vector<4x1xf32>
    %101 = vector.broadcast %100 : vector<4x1xf32> to vector<4x16xf32>
    %102 = arith.addf %99, %101 : vector<4x16xf32>
    %cst_59 = arith.constant 5.000000e-01 : f32
    %103 = vector.broadcast %cst_59 : f32 to vector<4x16xf32>
    %104 = arith.mulf %103, %102 : vector<4x16xf32>
    %cst_60 = arith.constant 4.471500e-02 : f32
    %105 = vector.broadcast %cst_60 : f32 to vector<4x16xf32>
    %106 = arith.mulf %105, %102 : vector<4x16xf32>
    %107 = arith.mulf %106, %102 : vector<4x16xf32>
    %108 = arith.mulf %107, %102 : vector<4x16xf32>
    %109 = arith.addf %102, %108 : vector<4x16xf32>
    %cst_61 = arith.constant 0.797884583 : f32
    %110 = vector.broadcast %cst_61 : f32 to vector<4x16xf32>
    %111 = arith.mulf %110, %109 : vector<4x16xf32>
    %112 = math.tanh %111 : vector<4x16xf32>
    %cst_62 = arith.constant 1.000000e+00 : f32
    %113 = vector.broadcast %cst_62 : f32 to vector<4x16xf32>
    %114 = arith.addf %113, %112 : vector<4x16xf32>
    %115 = arith.mulf %104, %114 : vector<4x16xf32>
    %116 = arith.addf %89, %115 : vector<4x16xf32>
    %cst_63 = arith.constant 5.000000e-01 : f32
    %117 = vector.broadcast %cst_63 : f32 to vector<4x16xf32>
    %118 = arith.mulf %117, %116 : vector<4x16xf32>
    %cst_64 = arith.constant 4.471500e-02 : f32
    %119 = vector.broadcast %cst_64 : f32 to vector<4x16xf32>
    %120 = arith.mulf %119, %116 : vector<4x16xf32>
    %121 = arith.mulf %120, %116 : vector<4x16xf32>
    %122 = arith.mulf %121, %116 : vector<4x16xf32>
    %123 = arith.addf %116, %122 : vector<4x16xf32>
    %cst_65 = arith.constant 0.797884583 : f32
    %124 = vector.broadcast %cst_65 : f32 to vector<4x16xf32>
    %125 = arith.mulf %124, %123 : vector<4x16xf32>
    %126 = math.tanh %125 : vector<4x16xf32>
    %cst_66 = arith.constant 1.000000e+00 : f32
    %127 = vector.broadcast %cst_66 : f32 to vector<4x16xf32>
    %128 = arith.addf %127, %126 : vector<4x16xf32>
    %129 = arith.mulf %118, %128 : vector<4x16xf32>
    %c0_67 = arith.constant 0 : index
    %c0_68 = arith.constant 0 : index
    %130 = vector.load %arg11[%c0_67, %c0_68] : memref<4x4xbf16, #tpu.memory_space<vmem>>, vector<4x4xbf16>
    %131 = arith.truncf %129 : vector<4x16xf32> to vector<4x16xbf16>
    %cst_69 = arith.constant dense<0.000000e+00> : vector<4x16xf32>
    %132 = tpu.matmul %130, %131, %cst_69 {dimension_numbers = #tpu.dot_dimension_numbers<[1], [0], [0], [1], [0, 0, 1, 1], [], []>} : vector<4x4xbf16>, vector<4x16xbf16>, vector<4x16xf32> -> vector<4x16xf32>
    %c0_70 = arith.constant 0 : index
    %c0_71 = arith.constant 0 : index
    %133 = vector.load %arg12[%c0_70, %c0_71] : memref<4x1xf32, #tpu.memory_space<vmem>>, vector<4x1xf32>
    %134 = vector.broadcast %133 : vector<4x1xf32> to vector<4x16xf32>
    %135 = arith.mulf %132, %134 : vector<4x16xf32>
    %c0_72 = arith.constant 0 : index
    %c0_73 = arith.constant 0 : index
    %136 = vector.load %arg13[%c0_72, %c0_73] : memref<4x1xf32, #tpu.memory_space<vmem>>, vector<4x1xf32>
    %137 = vector.broadcast %136 : vector<4x1xf32> to vector<4x16xf32>
    %138 = arith.addf %135, %137 : vector<4x16xf32>
    %139 = arith.addf %1, %138 : vector<4x16xf32>
    %c0_74 = arith.constant 0 : index
    %c3_75 = arith.constant 3 : index
    %140 = vector.load %arg23[%c0_74, %c3_75] : memref<4x22xf32, #tpu.memory_space<vmem>>, vector<4x16xf32>
    tpu.vector_store %arg23[%c0_74, %c3_75], %139 {strides = array<i32>} : memref<4x22xf32, #tpu.memory_space<vmem>>, vector<4x16xf32>,
    %c0_76 = arith.constant 0 : index
    %c0_77 = arith.constant 0 : index
    %141 = vector.load %arg14[%c0_76, %c0_77] : memref<4x7xf32, #tpu.memory_space<vmem>>, vector<4x7xf32>
    %cst_78 = arith.constant 0.000000e+00 : f32
    %142 = vector.broadcast %cst_78 : f32 to vector<4x16xf32>
    %c0_79 = arith.constant 0 : index
    %c0_80 = arith.constant 0 : index
    %143 = vector.load %arg23[%c0_79, %c0_80] : memref<4x22xf32, #tpu.memory_space<vmem>>, vector<4x16xf32>
    %144 = vector.extract_strided_slice %141 {offsets = [0, 0], sizes = [4, 1], strides = [1, 1]} : vector<4x7xf32> to vector<4x1xf32>
    %145 = vector.broadcast %144 : vector<4x1xf32> to vector<4x16xf32>
    %146 = arith.mulf %143, %145 : vector<4x16xf32>
    %147 = arith.addf %142, %146 : vector<4x16xf32>
    %c0_81 = arith.constant 0 : index
    %c1_82 = arith.constant 1 : index
    %148 = vector.load %arg23[%c0_81, %c1_82] : memref<4x22xf32, #tpu.memory_space<vmem>>, vector<4x16xf32>
    %149 = vector.extract_strided_slice %141 {offsets = [0, 1], sizes = [4, 1], strides = [1, 1]} : vector<4x7xf32> to vector<4x1xf32>
    %150 = vector.broadcast %149 : vector<4x1xf32> to vector<4x16xf32>
    %151 = arith.mulf %148, %150 : vector<4x16xf32>
    %152 = arith.addf %147, %151 : vector<4x16xf32>
    %c0_83 = arith.constant 0 : index
    %c2_84 = arith.constant 2 : index
    %153 = vector.load %arg23[%c0_83, %c2_84] : memref<4x22xf32, #tpu.memory_space<vmem>>, vector<4x16xf32>
    %154 = vector.extract_strided_slice %141 {offsets = [0, 2], sizes = [4, 1], strides = [1, 1]} : vector<4x7xf32> to vector<4x1xf32>
    %155 = vector.broadcast %154 : vector<4x1xf32> to vector<4x16xf32>
    %156 = arith.mulf %153, %155 : vector<4x16xf32>
    %157 = arith.addf %152, %156 : vector<4x16xf32>
    %c0_85 = arith.constant 0 : index
    %c3_86 = arith.constant 3 : index
    %158 = vector.load %arg23[%c0_85, %c3_86] : memref<4x22xf32, #tpu.memory_space<vmem>>, vector<4x16xf32>
    %159 = vector.extract_strided_slice %141 {offsets = [0, 3], sizes = [4, 1], strides = [1, 1]} : vector<4x7xf32> to vector<4x1xf32>
    %160 = vector.broadcast %159 : vector<4x1xf32> to vector<4x16xf32>
    %161 = arith.mulf %158, %160 : vector<4x16xf32>
    %162 = arith.addf %157, %161 : vector<4x16xf32>
    %c0_87 = arith.constant 0 : index
    %c4_88 = arith.constant 4 : index
    %163 = vector.load %arg23[%c0_87, %c4_88] : memref<4x22xf32, #tpu.memory_space<vmem>>, vector<4x16xf32>
    %164 = vector.extract_strided_slice %141 {offsets = [0, 4], sizes = [4, 1], strides = [1, 1]} : vector<4x7xf32> to vector<4x1xf32>
    %165 = vector.broadcast %164 : vector<4x1xf32> to vector<4x16xf32>
    %166 = arith.mulf %163, %165 : vector<4x16xf32>
    %167 = arith.addf %162, %166 : vector<4x16xf32>
    %c0_89 = arith.constant 0 : index
    %c5_90 = arith.constant 5 : index
    %168 = vector.load %arg23[%c0_89, %c5_90] : memref<4x22xf32, #tpu.memory_space<vmem>>, vector<4x16xf32>
    %169 = vector.extract_strided_slice %141 {offsets = [0, 5], sizes = [4, 1], strides = [1, 1]} : vector<4x7xf32> to vector<4x1xf32>
    %170 = vector.broadcast %169 : vector<4x1xf32> to vector<4x16xf32>
    %171 = arith.mulf %168, %170 : vector<4x16xf32>
    %172 = arith.addf %167, %171 : vector<4x16xf32>
    %c0_91 = arith.constant 0 : index
    %c6_92 = arith.constant 6 : index
    %173 = vector.load %arg23[%c0_91, %c6_92] : memref<4x22xf32, #tpu.memory_space<vmem>>, vector<4x16xf32>
    %174 = vector.extract_strided_slice %141 {offsets = [0, 6], sizes = [4, 1], strides = [1, 1]} : vector<4x7xf32> to vector<4x1xf32>
    %175 = vector.broadcast %174 : vector<4x1xf32> to vector<4x16xf32>
    %176 = arith.mulf %173, %175 : vector<4x16xf32>
    %177 = arith.addf %172, %176 : vector<4x16xf32>
    %c0_93 = arith.constant 0 : index
    %c0_94 = arith.constant 0 : index
    %178 = vector.load %arg15[%c0_93, %c0_94] : memref<4x1xf32, #tpu.memory_space<vmem>>, vector<4x1xf32>
    %179 = vector.broadcast %178 : vector<4x1xf32> to vector<4x16xf32>
    %180 = arith.mulf %177, %179 : vector<4x16xf32>
    %c0_95 = arith.constant 0 : index
    %c0_96 = arith.constant 0 : index
    %181 = vector.load %arg16[%c0_95, %c0_96] : memref<4x1xf32, #tpu.memory_space<vmem>>, vector<4x1xf32>
    %182 = vector.broadcast %181 : vector<4x1xf32> to vector<4x16xf32>
    %183 = arith.addf %180, %182 : vector<4x16xf32>
    %c0_97 = arith.constant 0 : index
    %c0_98 = arith.constant 0 : index
    %184 = vector.load %arg17[%c0_97, %c0_98] : memref<16x4xbf16, #tpu.memory_space<vmem>>, vector<16x4xbf16>
    %185 = arith.truncf %183 : vector<4x16xf32> to vector<4x16xbf16>
    %cst_99 = arith.constant dense<0.000000e+00> : vector<16x16xf32>
    %186 = tpu.matmul %184, %185, %cst_99 {dimension_numbers = #tpu.dot_dimension_numbers<[1], [0], [0], [1], [0, 0, 1, 1], [], []>} : vector<16x4xbf16>, vector<4x16xbf16>, vector<16x16xf32> -> vector<16x16xf32>
    %c0_100 = arith.constant 0 : index
    %c0_101 = arith.constant 0 : index
    %187 = vector.load %arg18[%c0_100, %c0_101] : memref<16x1xf32, #tpu.memory_space<vmem>>, vector<16x1xf32>
    %188 = vector.broadcast %187 : vector<16x1xf32> to vector<16x16xf32>
    %189 = arith.addf %186, %188 : vector<16x16xf32>
    %cst_102 = arith.constant 5.000000e-01 : f32
    %190 = vector.broadcast %cst_102 : f32 to vector<16x16xf32>
    %191 = arith.mulf %190, %189 : vector<16x16xf32>
    %cst_103 = arith.constant 4.471500e-02 : f32
    %192 = vector.broadcast %cst_103 : f32 to vector<16x16xf32>
    %193 = arith.mulf %192, %189 : vector<16x16xf32>
    %194 = arith.mulf %193, %189 : vector<16x16xf32>
    %195 = arith.mulf %194, %189 : vector<16x16xf32>
    %196 = arith.addf %189, %195 : vector<16x16xf32>
    %cst_104 = arith.constant 0.797884583 : f32
    %197 = vector.broadcast %cst_104 : f32 to vector<16x16xf32>
    %198 = arith.mulf %197, %196 : vector<16x16xf32>
    %199 = math.tanh %198 : vector<16x16xf32>
    %cst_105 = arith.constant 1.000000e+00 : f32
    %200 = vector.broadcast %cst_105 : f32 to vector<16x16xf32>
    %201 = arith.addf %200, %199 : vector<16x16xf32>
    %202 = arith.mulf %191, %201 : vector<16x16xf32>
    %c0_106 = arith.constant 0 : index
    %c0_107 = arith.constant 0 : index
    %203 = vector.load %arg19[%c0_106, %c0_107] : memref<4x16xbf16, #tpu.memory_space<vmem>>, vector<4x16xbf16>
    %204 = arith.truncf %202 : vector<16x16xf32> to vector<16x16xbf16>
    %cst_108 = arith.constant dense<0.000000e+00> : vector<4x16xf32>
    %205 = tpu.matmul %203, %204, %cst_108 {dimension_numbers = #tpu.dot_dimension_numbers<[1], [0], [0], [1], [0, 0, 1, 1], [], []>} : vector<4x16xbf16>, vector<16x16xbf16>, vector<4x16xf32> -> vector<4x16xf32>
    %c0_109 = arith.constant 0 : index
    %c0_110 = arith.constant 0 : index
    %206 = vector.load %arg20[%c0_109, %c0_110] : memref<4x1xf32, #tpu.memory_space<vmem>>, vector<4x1xf32>
    %207 = vector.broadcast %206 : vector<4x1xf32> to vector<4x16xf32>
    %208 = arith.mulf %205, %207 : vector<4x16xf32>
    %c0_111 = arith.constant 0 : index
    %c0_112 = arith.constant 0 : index
    %209 = vector.load %arg21[%c0_111, %c0_112] : memref<4x1xf32, #tpu.memory_space<vmem>>, vector<4x1xf32>
    %210 = vector.broadcast %209 : vector<4x1xf32> to vector<4x16xf32>
    %211 = arith.addf %208, %210 : vector<4x16xf32>
    %212 = arith.addf %139, %211 : vector<4x16xf32>
    %c0_113 = arith.constant 0 : index
    %c0_114 = arith.constant 0 : index
    %c0_115 = arith.constant 0 : index
    %213 = vector.load %arg22[%c0_113, %c0_114, %c0_115] : memref<1x4x16xf32, #tpu.memory_space<vmem>>, vector<1x4x16xf32>
    %214 = vector.shape_cast %213 : vector<1x4x16xf32> to vector<4x16xf32>
    %215 = vector.shape_cast %212 : vector<4x16xf32> to vector<1x4x16xf32>
    tpu.vector_store %arg22[%c0_113, %c0_114, %c0_115], %215 {strides = array<i32>} : memref<1x4x16xf32, #tpu.memory_space<vmem>>, vector<1x4x16xf32>,
    return
  }
  func.func @transform_0(%arg0: i32) -> (i32, i32, i32) {
    %c0_i32 = arith.constant 0 : i32
    %c0_i32_0 = arith.constant 0 : i32
    %c0_i32_1 = arith.constant 0 : i32
    return %arg0, %c0_i32, %c0_i32_0 : i32, i32, i32
  }
  func.func @transform_1(%arg0: i32) -> (i32, i32) {
    %c0_i32 = arith.constant 0 : i32
    %c0_i32_0 = arith.constant 0 : i32
    %c0_i32_1 = arith.constant 0 : i32
    return %c0_i32, %c0_i32_0 : i32, i32
  }
  func.func @transform_2(%arg0: i32) -> (i32, i32) {
    %c0_i32 = arith.constant 0 : i32
    %c0_i32_0 = arith.constant 0 : i32
    %c0_i32_1 = arith.constant 0 : i32
    return %c0_i32, %c0_i32_0 : i32, i32
  }
  func.func @transform_3(%arg0: i32) -> (i32, i32) {
    %c0_i32 = arith.constant 0 : i32
    %c0_i32_0 = arith.constant 0 : i32
    %c0_i32_1 = arith.constant 0 : i32
    return %c0_i32, %c0_i32_0 : i32, i32
  }
  func.func @transform_4(%arg0: i32) -> (i32, i32) {
    %c0_i32 = arith.constant 0 : i32
    %c0_i32_0 = arith.constant 0 : i32
    %c0_i32_1 = arith.constant 0 : i32
    return %c0_i32, %c0_i32_0 : i32, i32
  }
  func.func @transform_5(%arg0: i32) -> (i32, i32) {
    %c0_i32 = arith.constant 0 : i32
    %c0_i32_0 = arith.constant 0 : i32
    %c0_i32_1 = arith.constant 0 : i32
    return %c0_i32, %c0_i32_0 : i32, i32
  }
  func.func @transform_6(%arg0: i32) -> (i32, i32) {
    %c0_i32 = arith.constant 0 : i32
    %c0_i32_0 = arith.constant 0 : i32
    %c0_i32_1 = arith.constant 0 : i32
    return %c0_i32, %c0_i32_0 : i32, i32
  }
  func.func @transform_7(%arg0: i32) -> (i32, i32) {
    %c0_i32 = arith.constant 0 : i32
    %c0_i32_0 = arith.constant 0 : i32
    %c0_i32_1 = arith.constant 0 : i32
    return %c0_i32, %c0_i32_0 : i32, i32
  }
  func.func @transform_8(%arg0: i32) -> (i32, i32) {
    %c0_i32 = arith.constant 0 : i32
    %c0_i32_0 = arith.constant 0 : i32
    %c0_i32_1 = arith.constant 0 : i32
    return %c0_i32, %c0_i32_0 : i32, i32
  }
  func.func @transform_9(%arg0: i32) -> (i32, i32) {
    %c0_i32 = arith.constant 0 : i32
    %c0_i32_0 = arith.constant 0 : i32
    %c0_i32_1 = arith.constant 0 : i32
    return %c0_i32, %c0_i32_0 : i32, i32
  }
  func.func @transform_10(%arg0: i32) -> (i32, i32) {
    %c0_i32 = arith.constant 0 : i32
    %c0_i32_0 = arith.constant 0 : i32
    %c0_i32_1 = arith.constant 0 : i32
    return %c0_i32, %c0_i32_0 : i32, i32
  }
  func.func @transform_11(%arg0: i32) -> (i32, i32) {
    %c0_i32 = arith.constant 0 : i32
    %c0_i32_0 = arith.constant 0 : i32
    %c0_i32_1 = arith.constant 0 : i32
    return %c0_i32, %c0_i32_0 : i32, i32
  }
  func.func @transform_12(%arg0: i32) -> (i32, i32) {
    %c0_i32 = arith.constant 0 : i32
    %c0_i32_0 = arith.constant 0 : i32
    %c0_i32_1 = arith.constant 0 : i32
    return %c0_i32, %c0_i32_0 : i32, i32
  }
  func.func @transform_13(%arg0: i32) -> (i32, i32) {
    %c0_i32 = arith.constant 0 : i32
    %c0_i32_0 = arith.constant 0 : i32
    %c0_i32_1 = arith.constant 0 : i32
    return %c0_i32, %c0_i32_0 : i32, i32
  }
  func.func @transform_14(%arg0: i32) -> (i32, i32) {
    %c0_i32 = arith.constant 0 : i32
    %c0_i32_0 = arith.constant 0 : i32
    %c0_i32_1 = arith.constant 0 : i32
    return %c0_i32, %c0_i32_0 : i32, i32
  }
  func.func @transform_15(%arg0: i32) -> (i32, i32) {
    %c0_i32 = arith.constant 0 : i32
    %c0_i32_0 = arith.constant 0 : i32
    %c0_i32_1 = arith.constant 0 : i32
    return %c0_i32, %c0_i32_0 : i32, i32
  }
  func.func @transform_16(%arg0: i32) -> (i32, i32) {
    %c0_i32 = arith.constant 0 : i32
    %c0_i32_0 = arith.constant 0 : i32
    %c0_i32_1 = arith.constant 0 : i32
    return %c0_i32, %c0_i32_0 : i32, i32
  }
  func.func @transform_17(%arg0: i32) -> (i32, i32) {
    %c0_i32 = arith.constant 0 : i32
    %c0_i32_0 = arith.constant 0 : i32
    %c0_i32_1 = arith.constant 0 : i32
    return %c0_i32, %c0_i32_0 : i32, i32
  }
  func.func @transform_18(%arg0: i32) -> (i32, i32) {
    %c0_i32 = arith.constant 0 : i32
    %c0_i32_0 = arith.constant 0 : i32
    %c0_i32_1 = arith.constant 0 : i32
    return %c0_i32, %c0_i32_0 : i32, i32
  }
  func.func @transform_19(%arg0: i32) -> (i32, i32) {
    %c0_i32 = arith.constant 0 : i32
    %c0_i32_0 = arith.constant 0 : i32
    %c0_i32_1 = arith.constant 0 : i32
    return %c0_i32, %c0_i32_0 : i32, i32
  }
  func.func @transform_20(%arg0: i32) -> (i32, i32) {
    %c0_i32 = arith.constant 0 : i32
    %c0_i32_0 = arith.constant 0 : i32
    %c0_i32_1 = arith.constant 0 : i32
    return %c0_i32, %c0_i32_0 : i32, i32
  }
  func.func @transform_21(%arg0: i32) -> (i32, i32, i32) {
    %c0_i32 = arith.constant 0 : i32
    %c0_i32_0 = arith.constant 0 : i32
    %c0_i32_1 = arith.constant 0 : i32
    return %arg0, %c0_i32, %c0_i32_0 : i32, i32, i32
  }
}

</mosaic_0001>

<bundles_post_ra>
// kernel: tpu_custom_call.1
= control target key start
LH: loop header
LB: loop body
LE: loop exit
PB: predicated region body
PF: predicated region fallthrough
CT: control target
= control target key end

     0   :  { %s1885_s0 = inlined_call_operand.vmem [shape: f32[2,4,16], index: 0, kind: input, shape index: {}]   ;;  %s1886_s1 = inlined_call_operand.vmem [shape: f32[4,7], index: 1, kind: input, shape index: {}]   ;;  %s1887_s2 = inlined_call_operand.vmem [shape: f32[4,1], index: 2, kind: input, shape index: {}]   ;;  %s1888_s3 = inlined_call_operand.vmem [shape: f32[4,1], index: 3, kind: input, shape index: {}]   ;;  %s1889_s4 = inlined_call_operand.vmem [shape: bf16[4,12], index: 4, kind: input, shape index: {}]   ;;  %s1890_s5 = inlined_call_operand.vmem [shape: f32[4,1], index: 5, kind: input, shape index: {}]   ;;  %s1891_s6 = inlined_call_operand.vmem [shape: f32[4,1], index: 6, kind: input, shape index: {}]   ;;  %s1892_s7 = inlined_call_operand.vmem [shape: bf16[4,12], index: 7, kind: input, shape index: {}]   ;;  %s1893_s8 = inlined_call_operand.vmem [shape: f32[4,1], index: 8, kind: input, shape index: {}]   ;;  %s1894_s9 = inlined_call_operand.vmem [shape: f32[4,1], index: 9, kind: input, shape index: {}]   ;;  %s1895_s10 = inlined_call_operand.vmem [shape: bf16[4,4], index: 10, kind: input, shape index: {}]   ;;  %s1896_s11 = inlined_call_operand.vmem [shape: f32[4,1], index: 11, kind: input, shape index: {}]   ;;  %s1897_s12 = inlined_call_operand.vmem [shape: f32[4,1], index: 12, kind: input, shape index: {}]   ;;  %s1898_s13 = inlined_call_operand.vmem [shape: f32[4,7], index: 13, kind: input, shape index: {}]   ;;  %s1899_s14 = inlined_call_operand.vmem [shape: f32[4,1], index: 14, kind: input, shape index: {}]   ;;  %s1900_s15 = inlined_call_operand.vmem [shape: f32[4,1], index: 15, kind: input, shape index: {}]   ;;  %s1901_s16 = inlined_call_operand.vmem [shape: bf16[16,4], index: 16, kind: input, shape index: {}]   ;;  %s1902_s17 = inlined_call_operand.vmem [shape: f32[16,1], index: 17, kind: input, shape index: {}]   ;;  %s1903_s18 = inlined_call_operand.vmem [shape: bf16[4,16], index: 18, kind: input, shape index: {}]   ;;  %s1904_s19 = inlined_call_operand.vmem [shape: f32[4,1], index: 19, kind: input, shape index: {}]   ;;  %s1905_s20 = inlined_call_operand.vmem [shape: f32[4,1], index: 20, kind: input, shape index: {}]   ;;  %s1906_s21 = inlined_call_operand.hbm [shape: f32[2,4,16], index: 21, kind: output, shape index: {}]  }
   0x1   :  { %1921 = sst [smem:[#allocation10_spill]] %s1885_s0 }
   0x2   :  { %1922 = sst [smem:[#allocation11_spill]] %s1886_s1 }
   0x3   :  { %1923 = sst [smem:[#allocation12_spill]] %s1887_s2 }
   0x4   :  { %1924 = sst [smem:[#allocation13_spill]] %s1888_s3 }
   0x5   :  { %1925 = sst [smem:[#allocation14_spill]] %s1889_s4 }
   0x6   :  { %1926 = sst [smem:[#allocation15_spill]] %s1890_s5 }
   0x7   :  { %1927 = sst [smem:[#allocation16_spill]] %s1891_s6 }
   0x8   :  { %26 = vsyncpa [#allocation4], 0 }
   0x9   :  { %28 = vsyncpa [#allocation4 + $0x1], 0  ;;  %s1641_s2 = smov 0   ;;  %s1643_s25 = smov 0  }
   0xa   :  { %s1645_s26 = smov 0   ;;  %s1647_s27 = smov 0  }
   0xb LB: > { %1928 = sst [smem:[#allocation6_spill]] %s1508_s26  ;;  %s1662_s3 = sadd.s32 4294967295, %s1512_s27   ;;  %s1512_s27 = sphi %s1647_s27, %s1949_s27   ;;  %s1508_s26 = sphi %s1645_s26, %s1951_s26   ;;  %s1504_s25 = sphi %s1643_s25, %s1953_s25   ;;  %s1500_s2 = sphi %s1641_s2, %s1952_s2  }
   0xc   : > { %s1310_s28 = sadd.s32 4294967294, %s1512_s27   ;;  %s1666_s29 = sadd.s32 1, %s1512_s27  }
   0xd   : > { %1929 = sst [smem:[#allocation7_spill]] %s1666_s29  ;;  %s487_s0 = sadd.s32 1, %s1508_s26 }
   0xe   : > { %s484_s4 = ssub.s32 %s1512_s27, %s1666_s29  ;;  %p497_p0 = scmp.ne.s32.totalorder %s1508_s26, %s1504_s25 }
   0xf   : > { %p485_p1 = scmp.eq.s32.totalorder %s484_s4, 0  ;;  %p498_p2 = scmp.eq.s32.totalorder %s1662_s3, 1 }
  0x10   : > { %p503_p3 = scmp.ne.s32.totalorder %s1504_s25, %s1500_s2  ;;  %p504_p4 = scmp.eq.s32.totalorder %s1310_s28, 1 }
  0x11   : > { %s1677_s30 = scalar_select %p485_p1, %s1508_s26, %s487_s0  }
  0x12   : > { %p1679_p5 = por %p498_p2, %p497_p0  ;;  %p1683_p6 = por %p504_p4, %p503_p3 }
  0x13   : > { %1930 = sst [smem:[#allocation8_spill]] %s1677_s30  ;;  %p1313_p7 = scmp.ge.s32.totalorder %s1512_s27, 1 }
  0x14   : > { %s1932_s22 = scalar_select %p1683_p6, 1, 0 }
  0x15   : > { %p589_p8 = scmp.lt.s32.totalorder %s1512_s27, 3 }
  0x16   : > { %1933 = sst [smem:[#allocation9_spill]] %s1932_s22 }
  0x17   : > { %p590_p9 = pnand %p1313_p7, %p589_p8 }
  0x18   : > { %s1934_s24 = sld [smem:[#allocation11_spill]] (!%p590_p9)  ;;  %p648_p10 = scmp.lt.s32.totalorder (!%p590_p9), %s1662_s3, 1  ;;  %v1514_v1 = vmov (!%p590_p9), 2   ;;  %v1515_v2 = vmov (!%p590_p9), 1   ;;  %vm654_vm0 = vcmask (!%p590_p9), 19456   ;;  %vm656_vm1 = vcmask (!%p590_p9), 175256  }
  0x19   : > { %593 = sbr.rel (%p590_p9) target bundleno = 1940 (0x794), region = 104  ;;  %1422 = vset.pattern.permute.xlu1 (!%p590_p9), %v1514_v1  ;;  %1421 = vset.pattern.permute.xlu0 (!%p590_p9), %v1515_v2  ;;  %v1516_v3 = vmov (!%p590_p9), 0.0   ;;  %s1935_s1 = sld [smem:[#allocation10_spill]] (!%p590_p9)  ;;  %v1517_v4 = vmov (!%p590_p9), 3   ;;  %v1519_v6 = vmov (!%p590_p9), 4   ;;  %v1520_v7 = vmov (!%p590_p9), 5  }
  0x1a   : > { %655 = vst.msk [vmem:[#allocation2] sm:$0xf] (!%p590_p9), %vm654_vm0, %v1516_v3  ;;  %1342 = vmatprep.subr.bf16.mxu1 (!%p590_p9), %v1516_v3  ;;  %1336 = vmatprep.subr.bf16.mxu0 (!%p590_p9), %v1516_v3  ;;  %s1907_s30 = smov (!%p590_p9), 3   ;;  %v1521_v8 = vmov (!%p590_p9), 6   ;;  %v1522_v9 = vmov (!%p590_p9), 0   ;;  %s1936_s4 = sld [smem:[#allocation12_spill]] (!%p590_p9) }
  0x1b   : > { %657 = vst.msk [vmem:[#allocation2] sm:$0xf] (!%p590_p9), %vm656_vm1, %v1516_v3  ;;  %vm662_vm2 = vcmask (!%p590_p9), 150552   ;;  %s1920_s23 = smov (!%p590_p9), 126   ;;  %vm1529_vm3 = vmmov (!%p590_p9), 0   ;;  %s1940_s26 = smov (!%p590_p9), 125  }
  0x1c   : > { %1344 = vmatprep.mubr.msk.bf16.mxu1 (!%p590_p9), %vm1529_vm3, %v1516_v3  ;;  %1338 = vmatprep.mubr.msk.bf16.mxu0 (!%p590_p9), %vm1529_vm3, %v1516_v3  ;;  %v910_v57 = vld [vmem:[%s1894_s9] sm:$0xf] (!%p590_p9)  ;;  %vm770_vm4 = vcmask (!%p590_p9), 1043456   ;;  %vm781_vm5 = vcmask (!%p590_p9), 1045504   ;;  %s1942_s6 = sld [smem:[#allocation16_spill]] (!%p590_p9)  ;;  %vm777_vm6 = vcmask (!%p590_p9), 97280  }
  0x1d   : > { %vm942_vm7 = vcmask (!%p590_p9), 1041408   ;;  %vm938_vm8 = vcmask (!%p590_p9), 31744   ;;  %vm1176_vm9 = vcmask (!%p590_p9), 130048   ;;  %s645_s22 = sand.u32 (!%p590_p9), 1, %s1504_s25   ;;  %vm1235_vm10 = vcmask (!%p590_p9), 125952  }
  0x1e   : > { %v664_v0 = vld [vmem:[%s1934_s24] sm:$0xf] (!%p590_p9)  ;;  %s1238_s29 = scalar_lea.sflag (!%p590_p9), [#allocation4], %s645_s22 }
  0x1f   : > { %684 = vperm.xlu1 (!%p590_p9), %1422, %v664_v0  }
  0x20   : > { %s649_s28 = scalar_select %p648_p10, %s1662_s3, 1  ;;  %v733_v10 = vld [vmem:[%s1936_s4] sm:$0xf] }
  0x21   : > { %s1919_s4 = smov 122  }
  0x22   : > { %s1315_s0 = sshll.u32 %s649_s28, 2  ;;  %s1910_s28 = smov 127  }
  0x23   : > { %s651_s24 = scalar_lea.vmem %s1935_s1, %s1315_s0  ;;  %1423 = vset.pattern.permute.xlu1 %v1517_v4  ;;  %s1912_s0 = smov 125  }
  0x24   : > { %v1704_v5 = vld [vmem:[%s651_s24] sm:$0xf]  ;;  %694 = vperm.xlu1 %1423, %v664_v0   ;;  %s1909_s1 = smov 123   ;;  %s1938_s24 = smov 3  }
  0x25   : > { %659 = vrot.lane.b32.xlu0 %v1704_v5, %s1907_s30  ;;  %s1937_s30 = sld [smem:[#allocation13_spill]] }
  0x28   : > { %1424 = vset.pattern.permute.xlu1 %v1519_v6 }
  0x29   : > { %674 = vperm.xlu0 %1421, %v664_v0   ;;  %704 = vperm.xlu1 %1424, %v664_v0  }
  0x2b   : > { %v740_v15 = vld [vmem:[%s1937_s30] sm:$0xf]  ;;  %s1918_s30 = smov 124  }
  0x2d   : > { %1425 = vset.pattern.permute.xlu0 %v1520_v7  ;;  %1426 = vset.pattern.permute.xlu1 %v1521_v8 }
  0x2e   : > { %714 = vperm.xlu0 %1425, %v664_v0   ;;  %724 = vperm.xlu1 %1426, %v664_v0  }
  0x32   : > { %1428 = vset.pattern.permute.xlu0 %v1522_v9  ;;  %1427 = vset.pattern.permute.xlu1 %v1522_v9 }
  0x33   : > { %668 = vperm.xlu1 %1427, %v664_v0  }
  0x37   : > { %736 = vperm.xlu1 %1427, %v733_v10   ;;  %v903_v10 = vld [vmem:[%s1893_s8] sm:$0xf] }
  0x97   : > { %v660_v11 = vpop.permute.xlu0 %659 }
  0x98   : > { %663 = vst.msk [vmem:[#allocation2] sm:$0xf] %vm662_vm2, %v660_v11 }
  0x9e   : > { %v685_v12 = vpop.permute.xlu1 %684 }
  0x9f   : > { %v665_v13 = vld [vmem:[#allocation2] sm:$0xf] }
  0xa0   : > { %v687_v14 = vmul.f32 %v685_v12, %v665_v13 }
  0xa2   : > { %689 = vrot.lane.b32.xlu1 %v687_v14, %s1920_s23  ;;  %v855_v14 = vld [vmem:[%s1892_s7] sm:$0x3] }
  0xa3   : > { %v695_v16 = vpop.permute.xlu1 %694 }
  0xa4   : > { %v697_v20 = vmul.f32 %v695_v16, %v665_v13  ;;  %v993_v16 = vld [vmem:[%s1897_s12] sm:$0xf] }
  0xa6   : > { %743 = vperm.xlu1 %1427, %v740_v15   ;;  %v986_v15 = vld [vmem:[%s1896_s11] sm:$0xf] }
  0xa8   : > { %v675_v17 = vpop.permute.xlu0 %674  ;;  %v705_v19 = vpop.permute.xlu1 %704 }
  0xa9   : > { %v677_v18 = vmul.f32 %v675_v17, %v665_v13  ;;  %v707_v23 = vmul.f32 %v705_v19, %v665_v13 }
  0xab   : > { %679 = vrot.lane.b32.xlu0 %v677_v18, %s1910_s28  ;;  %s1945_s28 = smov 124  }
  0xad   : > { %v725_v21 = vpop.permute.xlu1 %724  ;;  %v715_v24 = vpop.permute.xlu0 %714 }
  0xae   : > { %v727_v22 = vmul.f32 %v725_v21, %v665_v13  ;;  %v717_v25 = vmul.f32 %v715_v24, %v665_v13 }
  0xaf   : > { %699 = vrot.lane.b32.xlu0 %v697_v20, %s1912_s0  ;;  %s1939_s0 = sld [smem:[#allocation15_spill]] }
  0xb0   : > { %729 = vrot.lane.b32.xlu1 %v727_v22, %s1919_s4 }
  0xb2   : > { %v669_v26 = vpop.permute.xlu1 %668 }
  0xb3   : > { %709 = vrot.lane.b32.xlu0 %v707_v23, %s1918_s30  ;;  %v671_v28 = vmul.f32 %v669_v26, %v665_v13  ;;  %v832_v13 = vld [vmem:[%s1942_s6] sm:$0xf] }
  0xb5   : > { %v825_v56 = vld [vmem:[%s1939_s0] sm:$0xf] }
  0xb6   : > { %v737_v27 = vpop.permute.xlu1 %736 }
  0xb7   : > { %719 = vrot.lane.b32.xlu0 %v717_v25, %s1909_s1  ;;  %s1943_s1 = sld [smem:[#allocation14_spill]] }
  0xbd   : > { %v772_v19 = vld [vmem:[%s1943_s1] sm:$0x3] }
 0x114   : > { %v690_v31 = vpop.permute.xlu1 %689 }
 0x11d   : > { %v680_v29 = vpop.permute.xlu0 %679 }
 0x11e   : > { %v682_v30 = vadd.f32 %v680_v29, %v671_v28 }
 0x120   : > { %v692_v33 = vadd.f32 %v690_v31, %v682_v30 }
 0x121   : > { %v700_v32 = vpop.permute.xlu0 %699 }
 0x122   : > { %v702_v36 = vadd.f32 %v700_v32, %v692_v33 }
 0x125   : > { %v744_v34 = vpop.permute.xlu1 %743  ;;  %v710_v35 = vpop.permute.xlu0 %709 }
 0x126   : > { %v712_v37 = vadd.f32 %v710_v35, %v702_v36 }
 0x129   : > { %v720_v38 = vpop.permute.xlu0 %719  ;;  %v730_v40 = vpop.permute.xlu1 %729 }
 0x12a   : > { %v722_v39 = vadd.f32 %v720_v38, %v712_v37 }
 0x12c   : > { %v732_v41 = vadd.f32 %v730_v40, %v722_v39 }
 0x12e   : > { %v739_v42 = vmul.f32 %v737_v27, %v732_v41 }
 0x130   : > { %v746_v43 = vadd.f32 %v744_v34, %v739_v42 }
 0x132   : > { %v748_v44 = vmul.f32 0.044715, %v746_v43  ;;  %v747_v50 = vmul.f32 0.5, %v746_v43 }
 0x134   : > { %v749_v45 = vmul.f32 %v748_v44, %v746_v43 }
 0x136   : > { %v750_v46 = vmul.f32 %v749_v45, %v746_v43 }
 0x138   : > { %v751_v47 = vadd.f32 %v750_v46, %v746_v43 }
 0x13a   : > { %v752_v48 = vmul.f32 0.7978846, %v751_v47 }
 0x13c   : > { %1438 = vtanh.f32 %v752_v48 }
 0x146   : > { %v1439_v49 = vpop.eup %1438 }
 0x147   : > { %v754_v51 = vadd.f32 1.0, %v1439_v49 }
 0x149   : > { %v755_v52 = vmul.f32 %v754_v51, %v747_v50 }
 0x14b   : > { %757 = vrot.lane.b32.xlu0 %v755_v52, %s1938_s24 }
 0x1bd   : > { %v758_v53 = vpop.permute.xlu0 %757 }
 0x1be   : > { %760 = vst.msk [vmem:[#allocation2] sm:$0xf] %vm662_vm2, %v758_v53 }
 0x1c5   : > { %v761_v54 = vld [vmem:[#allocation2] sm:$0xf] }
 0x1c6   : > { %767 = vrot.lane.b32.xlu0 %v761_v54, %s1918_s30  ;;  %v763_v55 = vrot.slane %v761_v54, 4  ;;  %s1941_s30 = smov 127  }
 0x1c8   : > { %764 = vrot.lane.b32.xlu1 %v763_v55, %s1920_s23 }
 0x1ca   : > { %851 = vrot.lane.b32.xlu0 %v761_v54, %s1919_s4  ;;  %s1947_s4 = smov 122  }
 0x1cc   : > { %848 = vrot.lane.b32.xlu1 %v763_v55, %s1940_s26 }
 0x1ce   : > { %828 = vperm.xlu0 %1428, %v825_v56  }
 0x1d2   : > { %913 = vperm.xlu0 %1428, %v910_v57  }
 0x1d6   : > { %996 = vperm.xlu0 %1428, %v993_v16  }
 0x1da   : > { %1429 = vset.pattern.permute.xlu0 %v1515_v2  ;;  %v1776_v2 = vld [vmem:[%s1898_s13] sm:$0xf] }
 0x1db   : > { %1016 = vperm.xlu0 %1429, %v1776_v2  }
 0x1df   : > { %1432 = vset.pattern.permute.xlu0 %v1519_v6 }
 0x1e0   : > { %1046 = vperm.xlu0 %1432, %v1776_v2  }
 0x1e4   : > { %1435 = vset.pattern.permute.xlu0 %v1522_v9 }
 0x1e5   : > { %1010 = vperm.xlu0 %1435, %v1776_v2  }
 0x238   : > { %v768_v58 = vpop.permute.xlu0 %767 }
 0x23a   : > { %v765_v59 = vpop.permute.xlu1 %764 }
 0x23b   : > { %v771_v60 = vsel %vm770_vm4, %v761_v54, %v765_v59 }
 0x23c   : > { %v773_v61 = vpack.c.bf16 %v768_v58, %v771_v60  ;;  %v852_v63 = vpop.permute.xlu0 %851 }
 0x23e   : > { %775 = vrot.lane.b32.xlu1 %v773_v61, %s1941_s30  ;;  %v849_v62 = vpop.permute.xlu1 %848 }
 0x23f   : > { %v854_v0 = vsel %vm770_vm4, %v761_v54, %v849_v62 }
 0x240   : > { %v856_v11 = vpack.c.bf16 %v852_v63, %v854_v0  ;;  %v936_v63 = vld [vmem:[%s1895_s10] sm:$0x3] }
 0x242   : > { %906 = vperm.xlu1 %1427, %v903_v10   ;;  %v861_v12 = vsel %vm781_vm5, %v856_v11, 0 }
 0x243   : > { %1343 = vmatpush3.bf16.msra.mxu1 %v861_v12 }
 0x244   : > { %1354 = vmatprep.subr.bf16.mxu1 %v1516_v3 }
 0x246   : > { %835 = vperm.xlu1 %1427, %v832_v13   ;;  %1345 = vmatmul.mubr.msk.bf16.vlgmr.msra.gmra.mrb[0].mxu1 %vm777_vm6, %v855_v14 }
 0x247   : > { %1356 = vmatprep.mubr.msk.bf16.mxu1 %vm1529_vm3, %v1516_v3 }
 0x24a   : > { %989 = vperm.xlu1 %1427, %v986_v15  }
 0x24d   : > { %v829_v23 = vpop.permute.xlu0 %828 }
 0x24e   : > { %1430 = vset.pattern.permute.xlu1 %v1514_v1 }
 0x24f   : > { %1026 = vperm.xlu1 %1430, %v1776_v2  }
 0x251   : > { %v914_v26 = vpop.permute.xlu0 %913 }
 0x253   : > { %1431 = vset.pattern.permute.xlu1 %v1517_v4 }
 0x255   : > { %v997_v13 = vpop.permute.xlu0 %996 }
 0x2b0   : > { %v776_v17 = vpop.permute.xlu1 %775 }
 0x2b1   : > { %v783_v18 = vsel %vm781_vm5, %v776_v17, 0 }
 0x2b2   : > { %1337 = vmatpush3.bf16.msra.mxu0 %v783_v18 }
 0x2b3   : > { %1348 = vmatprep.subr.bf16.mxu0 %v1516_v3 }
 0x2b5   : > { %1339 = vmatmul.mubr.msk.bf16.vlgmr.msra.gmra.mrb[0].mxu0 %vm777_vm6, %v772_v19  ;;  %v1017_v19 = vpop.permute.xlu0 %1016 }
 0x2b6   : > { %1350 = vmatprep.mubr.msk.bf16.mxu0 %vm1529_vm3, %v1516_v3 }
 0x2c1   : > { %v907_v24 = vpop.permute.xlu1 %906 }
 0x2c5   : > { %v836_v6 = vpop.permute.xlu1 %835 }
 0x2c9   : > { %v990_v0 = vpop.permute.xlu1 %989 }
 0x319   : > { %v897_v20 = vpop.f32.mrb[0].mxu1 }
 0x31a   : > { %v1346_v21 = vpop.f32.mrb[1].mxu1  ;;  %v909_v25 = vmul.f32 %v907_v24, %v897_v20 }
 0x31b   : > { %v900_v1 = vpop.f32.mrb[2].mxu1 }
 0x31c   : > { %v1347_v22 = vpop.f32.mrb[3].mxu1  ;;  %v916_v27 = vadd.f32 %v914_v26, %v909_v25 }
 0x31e   : > { %v918_v28 = vmul.f32 0.044715, %v916_v27  ;;  %v917_v46 = vmul.f32 0.5, %v916_v27 }
 0x320   : > { %v919_v29 = vmul.f32 %v918_v28, %v916_v27  ;;  %v1093_v28 = vld [vmem:[%s1902_s17 + $0x8] sm:$0xff] }
 0x322   : > { %v920_v30 = vmul.f32 %v919_v29, %v916_v27  ;;  %v1220_v29 = vld [vmem:[%s1904_s19] sm:$0xf] }
 0x324   : > { %v921_v4 = vadd.f32 %v920_v30, %v916_v27  ;;  %v1092_v27 = vld [vmem:[%s1902_s17] sm:$0xff] }
 0x325   : > { %v1227_v30 = vld [vmem:[%s1905_s20] sm:$0xf] }
 0x326   : > { %v922_v38 = vmul.f32 0.7978846, %v921_v4 }
 0x328   : > { %1440 = vtanh.f32 %v922_v38 }
 0x332   : > { %v1441_v43 = vpop.eup %1440 }
 0x333   : > { %v924_v44 = vadd.f32 1.0, %v1441_v43 }
 0x335   : > { %v925_v49 = vmul.f32 %v924_v44, %v917_v46 }
 0x388   : > { %v819_v31 = vpop.f32.mrb[0].mxu0 }
 0x389   : > { %v831_v32 = vmul.f32 %v829_v23, %v819_v31  ;;  %v1340_v33 = vpop.f32.mrb[1].mxu0 }
 0x38a   : > { %v822_v34 = vpop.f32.mrb[2].mxu0 }
 0x38b   : > { %v838_v35 = vadd.f32 %v836_v6, %v831_v32  ;;  %v1341_v36 = vpop.f32.mrb[3].mxu0 }
 0x38d   : > { %v840_v37 = vmul.f32 0.044715, %v838_v35  ;;  %v839_v47 = vmul.f32 0.5, %v838_v35 }
 0x38f   : > { %v841_v39 = vmul.f32 %v840_v37, %v838_v35 }
 0x391   : > { %v842_v40 = vmul.f32 %v841_v39, %v838_v35 }
 0x393   : > { %v843_v41 = vadd.f32 %v842_v40, %v838_v35 }
 0x395   : > { %v844_v42 = vmul.f32 0.7978846, %v843_v41 }
 0x397   : > { %1442 = vtanh.f32 %v844_v42 }
 0x3a1   : > { %v1443_v45 = vpop.eup %1442 }
 0x3a2   : > { %v846_v48 = vadd.f32 1.0, %v1443_v45 }
 0x3a4   : > { %v847_v50 = vmul.f32 %v846_v48, %v839_v47 }
 0x3a6   : > { %v926_v51 = vadd.f32 %v925_v49, %v847_v50  ;;  %v1437_v49 = vld [vmem:[%s1901_s16] sm:$0xff]  }
 0x3a8   : > { %v928_v52 = vmul.f32 0.044715, %v926_v51  ;;  %v927_v58 = vmul.f32 0.5, %v926_v51 }
 0x3aa   : > { %v929_v53 = vmul.f32 %v928_v52, %v926_v51 }
 0x3ac   : > { %v930_v54 = vmul.f32 %v929_v53, %v926_v51 }
 0x3ae   : > { %v931_v55 = vadd.f32 %v930_v54, %v926_v51 }
 0x3b0   : > { %v932_v56 = vmul.f32 0.7978846, %v931_v55 }
 0x3b2   : > { %1444 = vtanh.f32 %v932_v56 }
 0x3bc   : > { %v1445_v57 = vpop.eup %1444 }
 0x3bd   : > { %v934_v59 = vadd.f32 1.0, %v1445_v57 }
 0x3bf   : > { %v935_v60 = vmul.f32 %v934_v59, %v927_v58 }
 0x3c1   : > { %v937_v61 = vpack.c.bf16 %v935_v60, %v935_v60 }
 0x3c3   : > { %v944_v62 = vsel %vm942_vm7, %v937_v61, 0 }
 0x3c4   : > { %1349 = vmatpush3.bf16.msra.mxu0 %v944_v62 }
 0x3c5   : > { %1360 = vmatprep.subr.bf16.mxu0 %v1516_v3 }
 0x3c7   : > { %1351 = vmatmul.mubr.msk.bf16.vlgmr.msra.gmra.mrb[4].mxu0 %vm938_vm8, %v936_v63 }
 0x3c8   : > { %1362 = vmatprep.mubr.msk.bf16.mxu0 %vm1529_vm3, %v1516_v3  ;;  %v1075_v3 = vld [vmem:[%s1899_s14] sm:$0xf] }
 0x49a   : > { %v980_v10 = vpop.f32.mrb[4].mxu0 }
 0x49b   : > { %v992_v11 = vmul.f32 %v990_v0, %v980_v10  ;;  %v1352_v12 = vpop.f32.mrb[5].mxu0 }
 0x49c   : > { %v983_v14 = vpop.f32.mrb[6].mxu0 }
 0x49d   : > { %v999_v15 = vadd.f32 %v997_v13, %v992_v11  ;;  %v1353_v16 = vpop.f32.mrb[7].mxu0 }
 0x49f   : > { %v1794_v17 = vadd.f32 %v999_v15, %v1704_v5  ;;  %v1027_v5 = vpop.permute.xlu1 %1026 }
 0x4a1   : > { %1002 = vrot.lane.b32.xlu1 %v1794_v17, %s1938_s24  ;;  %s1944_s24 = smov 126  }
 0x4a5   : > { %1036 = vperm.xlu1 %1431, %v1776_v2  }
 0x4a9   : > { %1433 = vset.pattern.permute.xlu1 %v1520_v7 }
 0x4aa   : > { %1056 = vperm.xlu1 %1433, %v1776_v2  }
 0x4ae   : > { %1434 = vset.pattern.permute.xlu1 %v1521_v8  ;;  %v1082_v8 = vld [vmem:[%s1900_s15] sm:$0xf] }
 0x4af   : > { %1066 = vperm.xlu1 %1434, %v1776_v2  }
 0x4b3   : > { %1436 = vset.pattern.permute.xlu1 %v1522_v9  ;;  %v1047_v9 = vpop.permute.xlu0 %1046 }
 0x4b4   : > { %1078 = vperm.xlu1 %1436, %v1075_v3  }
 0x4b7   : > { %v1011_v32 = vpop.permute.xlu0 %1010 }
 0x513   : > { %v1003_v18 = vpop.permute.xlu1 %1002 }
 0x514   : > { %1005 = vst.msk [vmem:[#allocation2] sm:$0xf] %vm662_vm2, %v1003_v18 }
 0x51b   : > { %v1007_v20 = vld [vmem:[#allocation2] sm:$0xf] }
 0x51c   : > { %v1019_v7 = vmul.f32 %v1017_v19, %v1007_v20  ;;  %v1029_v21 = vmul.f32 %v1027_v5, %v1007_v20  ;;  %v1049_v2 = vmul.f32 %v1047_v9, %v1007_v20  ;;  %v1013_v34 = vmul.f32 %v1011_v32, %v1007_v20 }
 0x51e   : > { %1021 = vrot.lane.b32.xlu1 %v1019_v7, %s1941_s30  ;;  %s1946_s30 = smov 123   ;;  %v1174_v7 = vld [vmem:[%s1903_s18] sm:$0x3] }
 0x522   : > { %1031 = vrot.lane.b32.xlu1 %v1029_v21, %s1944_s24  ;;  %s1314_s24 = sshll.u32 %s645_s22, 2 }
 0x523   : > { %s647_s1 = scalar_lea.vmem [#allocation3], %s1314_s24 }
 0x524   : > { %v1037_v1 = vpop.permute.xlu1 %1036  ;;  %s1251_s23 = sshll.u32 %s647_s1, 4  ;;  %s1845_s23 = int_to_ptr.vmem [resolvable:$true] %s1251_s23 }
 0x525   : > { %v1039_v22 = vmul.f32 %v1037_v1, %v1007_v20 }
 0x526   : > { %1085 = vperm.xlu1 %1436, %v1082_v8  }
 0x527   : > { %1041 = vrot.lane.b32.xlu0 %v1039_v22, %s1940_s26  ;;  %s1323_s26 = sshll.u32 %s1662_s3, 6  ;;  %s1450_s3 = scalar_lea.vmem %s1845_s23, 64 }
 0x528   : > { %s1843_s0 = scalar_lea.hbm %s1906_s21, %s1323_s26  ;;  %p1451_p11 = scmp.ne.s32.totalorder %s1845_s23, %s1450_s3 }
 0x529   : > { %v1057_v23 = vpop.permute.xlu1 %1056 }
 0x52a   : > { %v1059_v24 = vmul.f32 %v1057_v23, %v1007_v20  ;;  %p1452_p12 = pnand %p1451_p11, %p1679_p5 }
 0x52b   : > { %1051 = vrot.lane.b32.xlu0 %v1049_v2, %s1945_s28 }
 0x52c   : > { %p1453_p13 = pneg %p1452_p12 }
 0x52e   : > { %v1067_v25 = vpop.permute.xlu1 %1066 }
 0x52f   : > { %v1069_v26 = vmul.f32 %v1067_v25, %v1007_v20  ;;  %1061 = vrot.lane.b32.xlu0 %v1059_v24, %s1946_s30 }
 0x531   : > { %1071 = vrot.lane.b32.xlu1 %v1069_v26, %s1947_s4  ;;  %s1530_s4 = smov [#allocation3]  }
 0x532   : > { %s1454_s24 = sshll.u32 %s1530_s4, 4  ;;  %s1455_s24 = int_to_ptr.vmem [resolvable:$false] %s1454_s24 }
 0x533   : > { %1096 = vperm.xlu0 %1435, %v1092_v27   ;;  %v1079_v31 = vpop.permute.xlu1 %1078  ;;  %s1456_s6 = scalar_lea.vmem %s1455_s24, 128  ;;  %p1457_p0 = scmp.lt.s32.totalorder %s1845_s23, %s1455_s24 }
 0x534   : > { %p1458_p1 = scmp.lt.s32.totalorder %s1456_s6, %s1450_s3 }
 0x535   : > { %1101 = vperm.xlu1 %1436, %v1093_v28  }
 0x536   : > { %p1459_p2 = por %p1458_p1, %p1457_p0 }
 0x537   : > { %1223 = vperm.xlu0 %1435, %v1220_v29  }
 0x538   : > { %p1460_p3 = pnand %p1459_p2, %p1453_p13 }
 0x539   : > { %1230 = vperm.xlu1 %1436, %v1227_v30  }
 0x590   : > { %v1022_v33 = vpop.permute.xlu1 %1021 }
 0x591   : > { %v1024_v36 = vadd.f32 %v1022_v33, %v1013_v34 }
 0x594   : > { %v1032_v4 = vpop.permute.xlu1 %1031 }
 0x595   : > { %v1034_v37 = vadd.f32 %v1032_v4, %v1024_v36 }
 0x599   : > { %v1042_v6 = vpop.permute.xlu0 %1041 }
 0x59a   : > { %v1044_v38 = vadd.f32 %v1042_v6, %v1034_v37 }
 0x59d   : > { %v1052_v35 = vpop.permute.xlu0 %1051 }
 0x59e   : > { %v1054_v41 = vadd.f32 %v1052_v35, %v1044_v38 }
 0x5a1   : > { %v1062_v39 = vpop.permute.xlu0 %1061 }
 0x5a2   : > { %v1064_v42 = vadd.f32 %v1062_v39, %v1054_v41 }
 0x5a5   : > { %v1086_v40 = vpop.permute.xlu1 %1085 }
 0x5a9   : > { %v1072_v43 = vpop.permute.xlu1 %1071 }
 0x5aa   : > { %v1074_v44 = vadd.f32 %v1072_v43, %v1064_v42 }
 0x5ac   : > { %v1081_v45 = vmul.f32 %v1079_v31, %v1074_v44 }
 0x5ae   : > { %v1088_v46 = vadd.f32 %v1086_v40, %v1081_v45 }
 0x5b0   : > { %v1091_v47 = vpack.c.bf16 %v1088_v46, %v1088_v46 }
 0x5b2   : > { %v1113_v48 = vsel %vm942_vm7, %v1091_v47, 0  ;;  %v1097_v50 = vpop.permute.xlu0 %1096 }
 0x5b3   : > { %1355 = vmatpush3.bf16.msra.mxu1 %v1113_v48 }
 0x5b4   : > { %v1102_v54 = vpop.permute.xlu1 %1101 }
 0x5b6   : > { %1357 = vmatmul.mubr.msk.bf16.vlgmr.msra.gmra.mrb[4].mxu1 %vm938_vm8, %v1437_v49  ;;  %v1224_v21 = vpop.permute.xlu0 %1223 }
 0x5b8   : > { %v1231_v9 = vpop.permute.xlu1 %1230 }
 0x689   : > { %v1149_v51 = vpop.f32.mrb[4].mxu1 }
 0x68a   : > { %v1150_v52 = vadd.f32 %v1149_v51, %v1097_v50  ;;  %v1358_v53 = vpop.f32.mrb[5].mxu1 }
 0x68b   : > { %v1152_v55 = vpop.f32.mrb[6].mxu1 }
 0x68c   : > { %v1158_v56 = vmul.f32 0.044715, %v1150_v52  ;;  %v1153_v57 = vadd.f32 %v1152_v55, %v1102_v54  ;;  %v1359_v58 = vpop.f32.mrb[7].mxu1  ;;  %v1156_v16 = vmul.f32 0.5, %v1150_v52 }
 0x68e   : > { %v1160_v59 = vmul.f32 %v1158_v56, %v1150_v52  ;;  %v1159_v60 = vmul.f32 0.044715, %v1153_v57  ;;  %v1157_v3 = vmul.f32 0.5, %v1153_v57 }
 0x690   : > { %v1162_v61 = vmul.f32 %v1160_v59, %v1150_v52  ;;  %v1161_v62 = vmul.f32 %v1159_v60, %v1153_v57 }
 0x692   : > { %v1164_v63 = vadd.f32 %v1162_v61, %v1150_v52  ;;  %v1163_v0 = vmul.f32 %v1161_v62, %v1153_v57 }
 0x694   : > { %v1166_v10 = vmul.f32 0.7978846, %v1164_v63  ;;  %v1165_v11 = vadd.f32 %v1163_v0, %v1153_v57 }
 0x696   : > { %1446 = vtanh.f32 %v1166_v10  ;;  %v1167_v12 = vmul.f32 0.7978846, %v1165_v11 }
 0x698   : > { %1448 = vtanh.f32 %v1167_v12 }
 0x6a0   : > { %v1447_v13 = vpop.eup %1446 }
 0x6a1   : > { %v1170_v14 = vadd.f32 1.0, %v1447_v13 }
 0x6a2   : > { %v1449_v15 = vpop.eup %1448 }
 0x6a3   : > { %v1171_v5 = vadd.f32 1.0, %v1449_v15  ;;  %v1172_v18 = vmul.f32 %v1170_v14, %v1156_v16 }
 0x6a5   : > { %v1173_v19 = vmul.f32 %v1171_v5, %v1157_v3 }
 0x6a7   : > { %v1175_v20 = vpack.c.bf16 %v1173_v19, %v1172_v18 }
 0x6a9   : > { %1361 = vmatpush3.bf16.msra.mxu0 %v1175_v20 }
 0x6ac   : > { %1363 = vmatmul.mubr.msk.bf16.vlgmr.msra.gmra.mrb[8].mxu0 %vm1176_vm9, %v1174_v7 }
 0x77f   : > { %v1214_v8 = vpop.f32.mrb[8].mxu0 }
 0x780   : > { %v1226_v1 = vmul.f32 %v1224_v21, %v1214_v8  ;;  %v1364_v22 = vpop.f32.mrb[9].mxu0 }
 0x781   : > { %v1217_v2 = vpop.f32.mrb[10].mxu0 }
 0x782   : > { %v1233_v23 = vadd.f32 %v1231_v9, %v1226_v1  ;;  %v1365_v24 = vpop.f32.mrb[11].mxu0 }
 0x784   : > { %v1234_v25 = vadd.f32 %v1233_v23, %v1794_v17 }
 0x786   : > { %1236 = vst.msk [vmem:[%s647_s1] sm:$0xf] %vm1235_vm10, %v1234_v25 }
 0x787   : > { %1463 = shalt.err (!%p1460_p3)
}
 0x788   : > { %s1464_s22 = scalar_lea.hbm %s1843_s0, 64  ;;  %s1468_s28 = scalar_lea.hbm %s1906_s21, 128 }
 0x789   : > { %p1465_p4 = scmp.ne.s32.totalorder %s1843_s0, %s1464_s22  ;;  %p1469_p9 = scmp.lt.u32.totalorder %s1843_s0, %s1906_s21 }
 0x78a   : > { %p1470_p10 = scmp.lt.u32.totalorder %s1468_s28, %s1464_s22  ;;  %p1472_p12 = scmp.lt.u32.totalorder %s1464_s22, %s1843_s0 }
 0x78b   : > { %p1466_p7 = pnand %p1465_p4, %p1679_p5 }
 0x78c   : > { %p1471_p11 = por %p1470_p10, %p1469_p9 }
 0x78d   : > { %p1467_p8 = pneg %p1466_p7 }
 0x78e   : > { %p1473_p13 = por %p1472_p12, %p1471_p11 }
 0x790   : > { %p1474_p0 = pnand %p1473_p13, %p1467_p8 }
 0x792   : > { %1477 = shalt.err (!%p1474_p0)
}
 0x793   : > { %1366 = dma.vmem_to_hbm [thread:$0]  (%p1679_p5), %s1845_s23, 64, %s1843_s0, %s1238_s29  }
 0x794 PF: > { %p1372_p1 = scmp.ge.s32.totalorder %s1512_s27, 2  ;;  %s1263_s3 = sand.u32 1, %s1500_s2  }
 0x795   : > { %s1264_s24 = scalar_lea.sflag [#allocation4], %s1263_s3 }
 0x796   : > { %p1369_p2 = pnand %p1372_p1, %p1683_p6 }
 0x798   : > { %1495 = dma.done.wait (!%p1369_p2), %s1264_s24, 64  }
 0x799   : > { %1497 = vsyncadd (!%p1369_p2), %s1264_s24, 4294967232  ;;  %s1949_s27 = sld [smem:[#allocation7_spill]]  ;;  %s1950_s22 = sld [smem:[#allocation6_spill]] }
 0x79a   : > { %s1951_s26 = sld [smem:[#allocation8_spill]]  ;;  %s1952_s2 = smov %s1504_s25 }
 0x79f   : > { %p31_p3 = scmp.ge.s32.totalorder %s1949_s27, 4   ;;  %s1953_s25 = smov %s1950_s22 }
 0x7a1   :  { %33 = sbr.rel (!%p31_p3) target bundleno = 11 (0xb), region = 139 }
 0x7a8   :  { %1269 = vsyncpa [#allocation4], 1 }
 0x7a9   :  { %1271 = vsyncpa [#allocation4 + $0x1], 1 }

</bundles_post_ra>
